<compile_context>
chip_gen: v7x
topology: tpu7x:2x2x1
jax: 0.10.0
libtpu: 0.0.40
codegen_flags: <defaults>
</compile_context>

<pallas_src>
import functools

import jax
import jax.numpy as jnp
from jax.experimental import pallas as pl
from jax.experimental.pallas import tpu as pltpu


INV_SQRT2 = 0.7071067811865476


def _exact_gelu(x):
    # PyTorch nn.GELU() default = exact erf-based GELU (kept in f32).
    return 0.5 * x * (1.0 + jax.lax.erf(x * INV_SQRT2))


def _encoder_kernel(ci_ref,                        # SMEM (B*M,) int32 (whole array)
                    emb_ref,                       # VMEM (1, N, D) f32 (aliased w/ out)
                    samp_ref,                      # VMEM (1, M_pad, D) f32
                    w1_ref, b1_ref, w2_ref, b2_ref,  # VMEM projector params (w* bf16)
                    out_ref,                       # VMEM (1, N, D) f32
                    *, real_m):
    _, N, D = out_ref.shape
    b = pl.program_id(0)

    # ---- projector MLP + residual for this image's M_pad sample rows --------
    samp = samp_ref[0]                                              # (M_pad, D) f32
    h = jnp.dot(samp.astype(jnp.bfloat16), w1_ref[...],
                preferred_element_type=jnp.float32) + b1_ref[...]   # (M_pad, 2D) f32
    h = _exact_gelu(h)
    y = jnp.dot(h.astype(jnp.bfloat16), w2_ref[...],
                preferred_element_type=jnp.float32) + b2_ref[...]   # (M_pad, D) f32
    y = y + samp                                                    # residual

    # ---- in-register scatter (ordered select chain => last-write-wins),
    #      fused with the L2 normalize; one lane-dense store for this slab ----
    # Only the real_m rows participate; padded rows of y are never selected.
    # NOTE: for much larger M, compute a per-row winner index instead of M
    #       full-slab where-passes (see perf review) — fine at M=3 here.
    row_ids = jax.lax.broadcasted_iota(jnp.int32, (N, 1), 0)        # (N, 1)
    acc = emb_ref[0]                                                # (N, D)
    for m in range(real_m):                                         # static, small M
        idx = ci_ref[b * real_m + m]                                # scalar from SMEM
        acc = jnp.where(row_ids == idx, y[m:m + 1, :], acc)         # stays in vregs
    # L2 normalization over D: x * rsqrt(sum(x^2)) (EUP rsqrt + VALU mul).
    # PyTorch divides by the raw norm (no eps), so none is added here.
    inv_norm = jax.lax.rsqrt(jnp.sum(acc * acc, axis=-1, keepdims=True))
    out_ref[0] = acc * inv_norm


def image_prompt_encoder_forward(embeddings, sample_embeddings, class_inds, params):
    """embeddings: (B, N, D) f32; sample_embeddings: (B, M, D) f32 (already
    L2-normed, i.e. the output of forward_vision_encoder); class_inds: (B, M)
    int32; params = (w1, b1, w2, b2) with w* stored/streamed as bf16.

    NOTE: the embeddings buffer is aliased to the output (donated); callers
    must not reuse `embeddings` after this call.
    """
    B, N, D = embeddings.shape
    M = sample_embeddings.shape[1]
    w1, b1, w2, b2 = params

    # Weights streamed in bf16 (dominant HBM bytes); biases & activations f32.
    w1 = w1.astype(jnp.bfloat16)
    w2 = w2.astype(jnp.bfloat16)

    # Host-side layout plumbing (free): pad M up to the 8-sublane granule so
    # the MXU feed and the (M_pad, 2D) intermediate are unmasked, and flatten
    # class_inds to 1-D for compact SMEM packing.
    M_pad = ((M + 7) // 8) * 8
    samp = jnp.zeros((B, M_pad, D), jnp.float32).at[:, :M, :].set(sample_embeddings)
    ci_flat = class_inds.reshape(B * M).astype(jnp.int32)

    # Advisory cost hint so XLA can overlap this latency-bound call.
    flops = 2 * B * M_pad * D * (2 * D) * 2                   # two matmuls
    transcendentals = B * M_pad * (2 * D) + B * N             # erf + rsqrt
    bytes_accessed = (ci_flat.size * 4
                      + embeddings.size * 4 * 2               # aliased in + out
                      + samp.size * 4
                      + w1.size * 2 + w2.size * 2
                      + b1.size * 4 + b2.size * 4)

    kernel = functools.partial(_encoder_kernel, real_m=M)

    return pl.pallas_call(
        kernel,
        out_shape=jax.ShapeDtypeStruct((B, N, D), jnp.float32),
        grid=(B,),
        in_specs=[
            # class_inds: whole 1-D array in SMEM (scalar indexed per step).
            pl.BlockSpec(memory_space=pltpu.MemorySpace.SMEM),
            # embeddings (aliased to the output): one (N, D) slab per step.
            pl.BlockSpec((1, N, D), lambda b: (b, 0, 0)),
            # sample embeddings: this image's padded M_pad rows.
            pl.BlockSpec((1, M_pad, D), lambda b: (b, 0, 0)),
            # projector params: constant index_maps -> DMA'd once, VMEM-resident.
            pl.BlockSpec((D, 2 * D), lambda b: (0, 0)),        # w1 (bf16)
            pl.BlockSpec((1, 2 * D), lambda b: (0, 0)),        # b1 (f32)
            pl.BlockSpec((2 * D, D), lambda b: (0, 0)),        # w2 (bf16)
            pl.BlockSpec((1, D), lambda b: (0, 0)),            # b2 (f32)
        ],
        out_specs=pl.BlockSpec((1, N, D), lambda b: (b, 0, 0)),
        input_output_aliases={1: 0},   # reuse the embeddings HBM buffer as output
        compiler_params=pltpu.CompilerParams(
            dimension_semantics=("parallel",)),
        cost_estimate=pl.CostEstimate(flops=flops,
                                      transcendentals=transcendentals,
                                      bytes_accessed=bytes_accessed),
    )(ci_flat, embeddings, samp, w1, b1, w2, b2)


def _reference_forward(embeddings, sample_embeddings, class_inds, params):
    """Pure-JAX reference with identical semantics (for verification).

    Mirrors the kernel's bf16 weight streaming (bf16 matmul operands, f32
    accumulation); scatter is last-write-wins; normalize is sqrt-then-divide
    as in PyTorch (kernel uses rsqrt*x — same to ~1 ulp).
    """
    w1, b1, w2, b2 = params
    w1 = w1.astype(jnp.bfloat16)
    w2 = w2.astype(jnp.bfloat16)
    s = sample_embeddings
    h = jnp.dot(s.astype(jnp.bfloat16), w1, preferred_element_type=jnp.float32) + b1
    h = _exact_gelu(h)
    y = jnp.dot(h.astype(jnp.bfloat16), w2, preferred_element_type=jnp.float32) + b2
    y = y + s                                                   # (B, M, D)
    out = embeddings
    B = embeddings.shape[0]
    M = class_inds.shape[1]
    for b in range(B):
        for m in range(M):
            out = out.at[b, class_inds[b, m]].set(y[b, m])
    norm = jnp.sqrt(jnp.sum(out * out, axis=-1, keepdims=True))
    return out / norm


if __name__ == "__main__":
    # Small shapes consistent with the module: real dim=512 -> D=128 here (kept
    # a multiple of 128 so the output stays lane-dense), N prompt slots per
    # image, M cropped-region (bbox) samples per image.
    B, N, M, D = 2, 8, 3, 128

    key = jax.random.PRNGKey(0)
    k_emb, k_samp, k_w1, k_b1, k_w2, k_b2, k_ci = jax.random.split(key, 7)

    # Prompt embeddings (B, N, D).
    embeddings = jax.random.normal(k_emb, (B, N, D), dtype=jnp.float32)

    # Simulated CLIP image_embeds for the cropped regions, L2-normalized as
    # forward_vision_encoder does.
    samp = jax.random.normal(k_samp, (B, M, D), dtype=jnp.float32)
    samp = samp / jnp.linalg.norm(samp, axis=-1, keepdims=True)

    # Deterministic projector params: Linear(D, 2D) -> GELU -> Linear(2D, D),
    # stored as (in, out) so kernel matmuls are x @ W (== PyTorch x @ W.T).
    lim1 = 1.0 / jnp.sqrt(jnp.float32(D))
    lim2 = 1.0 / jnp.sqrt(jnp.float32(2 * D))
    w1 = jax.random.uniform(k_w1, (D, 2 * D), jnp.float32, -lim1, lim1)
    b1 = jax.random.uniform(k_b1, (1, 2 * D), jnp.float32, -lim1, lim1)
    w2 = jax.random.uniform(k_w2, (2 * D, D), jnp.float32, -lim2, lim2)
    b2 = jax.random.uniform(k_b2, (1, D), jnp.float32, -lim2, lim2)
    params = (w1, b1, w2, b2)

    # class_inds[b] selects which of the N prompt slots each region overwrites.
    class_inds = jax.random.permutation(k_ci, N)[:M]
    class_inds = jnp.stack([class_inds, (class_inds + 1) % N]).astype(jnp.int32)  # (B, M)

    # Reference first (the kernel aliases/donates the embeddings buffer).
    ref = jax.block_until_ready(_reference_forward(embeddings, samp, class_inds, params))

    out = image_prompt_encoder_forward(embeddings, samp, class_inds, params)
    out = jax.block_until_ready(out)

    assert out.shape == (B, N, D)
    assert jnp.allclose(out, ref, atol=1e-4, rtol=1e-4), "mismatch vs reference"

    print("KERNEL_OK")
</pallas_src>

<mosaic_0001>
module attributes {stable_mosaic.version = 11 : i64} {
  func.func @_encoder_kernel(%arg0: i32, %arg1: memref<6xi32, #tpu.memory_space<smem>>, %arg2: memref<1x8x128xf32, #tpu.memory_space<vmem>>, %arg3: memref<1x8x128xf32, #tpu.memory_space<vmem>>, %arg4: memref<128x256xbf16, #tpu.memory_space<vmem>>, %arg5: memref<1x256xf32, #tpu.memory_space<vmem>>, %arg6: memref<256x128xbf16, #tpu.memory_space<vmem>>, %arg7: memref<1x128xf32, #tpu.memory_space<vmem>>, %arg8: memref<1x8x128xf32, #tpu.memory_space<vmem>>) attributes {dimension_semantics = [#tpu.dimension_semantics<parallel>], iteration_bounds = array<i64: 2>, scalar_prefetch = 0 : i64, scratch_operands = 0 : i64, tpu.core_type = #tpu.core_type<tc>, window_params = [{transform_indices = @transform_0, window_bounds = array<i64: 6>}, {transform_indices = @transform_1, window_bounds = array<i64: 1, 8, 128>}, {transform_indices = @transform_2, window_bounds = array<i64: 1, 8, 128>}, {pipeline_mode = #tpu.pipeline_mode<synchronous>, transform_indices = @transform_3, window_bounds = array<i64: 128, 256>}, {pipeline_mode = #tpu.pipeline_mode<synchronous>, transform_indices = @transform_4, window_bounds = array<i64: 1, 256>}, {pipeline_mode = #tpu.pipeline_mode<synchronous>, transform_indices = @transform_5, window_bounds = array<i64: 256, 128>}, {pipeline_mode = #tpu.pipeline_mode<synchronous>, transform_indices = @transform_6, window_bounds = array<i64: 1, 128>}, {transform_indices = @transform_7, window_bounds = array<i64: 1, 8, 128>}]} {
    %c0 = arith.constant 0 : index
    %c0_0 = arith.constant 0 : index
    %c0_1 = arith.constant 0 : index
    %0 = vector.load %arg3[%c0, %c0_0, %c0_1] : memref<1x8x128xf32, #tpu.memory_space<vmem>>, vector<1x8x128xf32>
    %1 = vector.shape_cast %0 : vector<1x8x128xf32> to vector<8x128xf32>
    %2 = arith.truncf %1 : vector<8x128xf32> to vector<8x128xbf16>
    %c0_2 = arith.constant 0 : index
    %c0_3 = arith.constant 0 : index
    %3 = vector.load %arg4[%c0_2, %c0_3] : memref<128x256xbf16, #tpu.memory_space<vmem>>, vector<128x256xbf16>
    %cst = arith.constant dense<0.000000e+00> : vector<8x256xf32>
    %4 = tpu.matmul %2, %3, %cst {dimension_numbers = #tpu.dot_dimension_numbers<[1], [0], [0], [1], [0, 0, 1, 1], [], []>} : vector<8x128xbf16>, vector<128x256xbf16>, vector<8x256xf32> -> vector<8x256xf32>
    %c0_4 = arith.constant 0 : index
    %c0_5 = arith.constant 0 : index
    %5 = vector.load %arg5[%c0_4, %c0_5] : memref<1x256xf32, #tpu.memory_space<vmem>>, vector<1x256xf32>
    %6 = vector.broadcast %5 : vector<1x256xf32> to vector<8x256xf32>
    %7 = arith.addf %4, %6 : vector<8x256xf32>
    %cst_6 = arith.constant 5.000000e-01 : f32
    %8 = vector.broadcast %cst_6 : f32 to vector<8x256xf32>
    %9 = arith.mulf %8, %7 : vector<8x256xf32>
    %cst_7 = arith.constant 0.707106769 : f32
    %10 = vector.broadcast %cst_7 : f32 to vector<8x256xf32>
    %11 = arith.mulf %7, %10 : vector<8x256xf32>
    %12 = math.erf %11 : vector<8x256xf32>
    %cst_8 = arith.constant 1.000000e+00 : f32
    %13 = vector.broadcast %cst_8 : f32 to vector<8x256xf32>
    %14 = arith.addf %13, %12 : vector<8x256xf32>
    %15 = arith.mulf %9, %14 : vector<8x256xf32>
    %16 = arith.truncf %15 : vector<8x256xf32> to vector<8x256xbf16>
    %c0_9 = arith.constant 0 : index
    %c0_10 = arith.constant 0 : index
    %17 = vector.load %arg6[%c0_9, %c0_10] : memref<256x128xbf16, #tpu.memory_space<vmem>>, vector<256x128xbf16>
    %cst_11 = arith.constant dense<0.000000e+00> : vector<8x128xf32>
    %18 = tpu.matmul %16, %17, %cst_11 {dimension_numbers = #tpu.dot_dimension_numbers<[1], [0], [0], [1], [0, 0, 1, 1], [], []>} : vector<8x256xbf16>, vector<256x128xbf16>, vector<8x128xf32> -> vector<8x128xf32>
    %c0_12 = arith.constant 0 : index
    %c0_13 = arith.constant 0 : index
    %19 = vector.load %arg7[%c0_12, %c0_13] : memref<1x128xf32, #tpu.memory_space<vmem>>, vector<1x128xf32>
    %20 = vector.broadcast %19 : vector<1x128xf32> to vector<8x128xf32>
    %21 = arith.addf %18, %20 : vector<8x128xf32>
    %22 = arith.addf %21, %1 : vector<8x128xf32>
    %23 = tpu.iota {dimensions = array<i32: 0>} : vector<8x1xi32>
    %c0_14 = arith.constant 0 : index
    %c0_15 = arith.constant 0 : index
    %c0_16 = arith.constant 0 : index
    %24 = vector.load %arg2[%c0_14, %c0_15, %c0_16] : memref<1x8x128xf32, #tpu.memory_space<vmem>>, vector<1x8x128xf32>
    %25 = vector.shape_cast %24 : vector<1x8x128xf32> to vector<8x128xf32>
    %c3_i32 = arith.constant 3 : i32
    %26 = arith.muli %arg0, %c3_i32 : i32
    %c0_i32 = arith.constant 0 : i32
    %27 = arith.addi %26, %c0_i32 : i32
    %28 = arith.index_cast %27 : i32 to index
    %29 = memref.load %arg1[%28] : memref<6xi32, #tpu.memory_space<smem>>
    %30 = vector.broadcast %29 : i32 to vector<8x1xi32>
    %31 = arith.cmpi eq, %23, %30 : vector<8x1xi32>
    %32 = vector.extract_strided_slice %22 {offsets = [0, 0], sizes = [1, 128], strides = [1, 1]} : vector<8x128xf32> to vector<1x128xf32>
    %33 = vector.shape_cast %31 : vector<8x1xi1> to vector<8x1xi1>
    %34 = vector.broadcast %33 : vector<8x1xi1> to vector<8x128xi1>
    %35 = vector.shape_cast %32 : vector<1x128xf32> to vector<1x128xf32>
    %36 = vector.broadcast %35 : vector<1x128xf32> to vector<8x128xf32>
    %37 = arith.select %34, %36, %25 : vector<8x128xi1>, vector<8x128xf32>
    %c3_i32_17 = arith.constant 3 : i32
    %38 = arith.muli %arg0, %c3_i32_17 : i32
    %c1_i32 = arith.constant 1 : i32
    %39 = arith.addi %38, %c1_i32 : i32
    %40 = arith.index_cast %39 : i32 to index
    %41 = memref.load %arg1[%40] : memref<6xi32, #tpu.memory_space<smem>>
    %42 = vector.broadcast %41 : i32 to vector<8x1xi32>
    %43 = arith.cmpi eq, %23, %42 : vector<8x1xi32>
    %44 = vector.extract_strided_slice %22 {offsets = [1, 0], sizes = [1, 128], strides = [1, 1]} : vector<8x128xf32> to vector<1x128xf32>
    %45 = vector.shape_cast %43 : vector<8x1xi1> to vector<8x1xi1>
    %46 = vector.broadcast %45 : vector<8x1xi1> to vector<8x128xi1>
    %47 = vector.shape_cast %44 : vector<1x128xf32> to vector<1x128xf32>
    %48 = vector.broadcast %47 : vector<1x128xf32> to vector<8x128xf32>
    %49 = arith.select %46, %48, %37 : vector<8x128xi1>, vector<8x128xf32>
    %c3_i32_18 = arith.constant 3 : i32
    %50 = arith.muli %arg0, %c3_i32_18 : i32
    %c2_i32 = arith.constant 2 : i32
    %51 = arith.addi %50, %c2_i32 : i32
    %52 = arith.index_cast %51 : i32 to index
    %53 = memref.load %arg1[%52] : memref<6xi32, #tpu.memory_space<smem>>
    %54 = vector.broadcast %53 : i32 to vector<8x1xi32>
    %55 = arith.cmpi eq, %23, %54 : vector<8x1xi32>
    %56 = vector.extract_strided_slice %22 {offsets = [2, 0], sizes = [1, 128], strides = [1, 1]} : vector<8x128xf32> to vector<1x128xf32>
    %57 = vector.shape_cast %55 : vector<8x1xi1> to vector<8x1xi1>
    %58 = vector.broadcast %57 : vector<8x1xi1> to vector<8x128xi1>
    %59 = vector.shape_cast %56 : vector<1x128xf32> to vector<1x128xf32>
    %60 = vector.broadcast %59 : vector<1x128xf32> to vector<8x128xf32>
    %61 = arith.select %58, %60, %49 : vector<8x128xi1>, vector<8x128xf32>
    %62 = arith.mulf %61, %61 : vector<8x128xf32>
    %cst_19 = arith.constant dense<0.000000e+00> : vector<8xf32>
    %63 = vector.multi_reduction <add>, %62, %cst_19 [1] : vector<8x128xf32> to vector<8xf32>
    %64 = vector.shape_cast %63 : vector<8xf32> to vector<8x1xf32>
    %65 = math.rsqrt %64 : vector<8x1xf32>
    %66 = vector.broadcast %65 : vector<8x1xf32> to vector<8x128xf32>
    %67 = arith.mulf %61, %66 : vector<8x128xf32>
    %c0_20 = arith.constant 0 : index
    %c0_21 = arith.constant 0 : index
    %c0_22 = arith.constant 0 : index
    %68 = vector.load %arg8[%c0_20, %c0_21, %c0_22] : memref<1x8x128xf32, #tpu.memory_space<vmem>>, vector<1x8x128xf32>
    %69 = vector.shape_cast %68 : vector<1x8x128xf32> to vector<8x128xf32>
    %70 = vector.shape_cast %67 : vector<8x128xf32> to vector<1x8x128xf32>
    tpu.vector_store %arg8[%c0_20, %c0_21, %c0_22], %70 {strides = array<i32>} : memref<1x8x128xf32, #tpu.memory_space<vmem>>, vector<1x8x128xf32>,
    return
  }
  func.func @transform_0(%arg0: i32) -> i32 {
    %c0_i32 = arith.constant 0 : i32
    %c0_i32_0 = arith.constant 0 : i32
    return %c0_i32 : i32
  }
  func.func @transform_1(%arg0: i32) -> (i32, i32, i32) {
    %c0_i32 = arith.constant 0 : i32
    %c0_i32_0 = arith.constant 0 : i32
    %c0_i32_1 = arith.constant 0 : i32
    return %arg0, %c0_i32, %c0_i32_0 : i32, i32, i32
  }
  func.func @transform_2(%arg0: i32) -> (i32, i32, i32) {
    %c0_i32 = arith.constant 0 : i32
    %c0_i32_0 = arith.constant 0 : i32
    %c0_i32_1 = arith.constant 0 : i32
    return %arg0, %c0_i32, %c0_i32_0 : i32, i32, i32
  }
  func.func @transform_3(%arg0: i32) -> (i32, i32) {
    %c0_i32 = arith.constant 0 : i32
    %c0_i32_0 = arith.constant 0 : i32
    %c0_i32_1 = arith.constant 0 : i32
    return %c0_i32, %c0_i32_0 : i32, i32
  }
  func.func @transform_4(%arg0: i32) -> (i32, i32) {
    %c0_i32 = arith.constant 0 : i32
    %c0_i32_0 = arith.constant 0 : i32
    %c0_i32_1 = arith.constant 0 : i32
    return %c0_i32, %c0_i32_0 : i32, i32
  }
  func.func @transform_5(%arg0: i32) -> (i32, i32) {
    %c0_i32 = arith.constant 0 : i32
    %c0_i32_0 = arith.constant 0 : i32
    %c0_i32_1 = arith.constant 0 : i32
    return %c0_i32, %c0_i32_0 : i32, i32
  }
  func.func @transform_6(%arg0: i32) -> (i32, i32) {
    %c0_i32 = arith.constant 0 : i32
    %c0_i32_0 = arith.constant 0 : i32
    %c0_i32_1 = arith.constant 0 : i32
    return %c0_i32, %c0_i32_0 : i32, i32
  }
  func.func @transform_7(%arg0: i32) -> (i32, i32, i32) {
    %c0_i32 = arith.constant 0 : i32
    %c0_i32_0 = arith.constant 0 : i32
    %c0_i32_1 = arith.constant 0 : i32
    return %arg0, %c0_i32, %c0_i32_0 : i32, i32, i32
  }
}

</mosaic_0001>

<bundles_post_ra>
// kernel: tpu_custom_call.1
= control target key start
LH: loop header
LB: loop body
LE: loop exit
PB: predicated region body
PF: predicated region fallthrough
CT: control target
= control target key end

     0   :  { %12 = vsyncpa [#allocation5], 0  ;;  %s1559_s0 = inlined_call_operand.vmem [shape: s32[6], index: 0, kind: input, shape index: {}]   ;;  %s1560_s1 = inlined_call_operand.hbm [shape: f32[2,8,128], index: 1, kind: input, shape index: {}, may-alias: {1,7}]   ;;  %s1561_s2 = inlined_call_operand.vmem [shape: f32[2,8,128], index: 2, kind: input, shape index: {}]   ;;  %s1562_s3 = inlined_call_operand.hbm [shape: bf16[128,256], index: 3, kind: input, shape index: {}]   ;;  %s1563_s4 = inlined_call_operand.vmem [shape: f32[1,256], index: 4, kind: input, shape index: {}]   ;;  %s1564_s5 = inlined_call_operand.hbm [shape: bf16[256,128], index: 5, kind: input, shape index: {}]   ;;  %s1565_s6 = inlined_call_operand.vmem [shape: f32[1,128], index: 6, kind: input, shape index: {}]   ;;  %s1566_s7 = inlined_call_operand.hbm [shape: f32[2,8,128], index: 7, kind: output, shape index: {}, may-alias: {1,7}]  }
   0x1   :  { %13 = vsyncpa [#allocation3], 0 }
   0x2   :  { %15 = vsyncpa [#allocation3 + $0x1], 0 }
   0x3   :  { %16 = vsyncpa [#allocation8], 0 }
   0x4   :  { %17 = vsyncpa [#allocation4], 0 }
   0x5   :  { %19 = vsyncpa [#allocation4 + $0x1], 0  ;;  %s1292_s24 = smov 0   ;;  %s1294_s25 = smov 0  }
   0x6   :  { %s1296_s26 = smov 0   ;;  %s1298_s27 = smov 0  }
   0x7 LB: > { %s1313_s28 = sadd.s32 4294967295, %s1240_s27   ;;  %s863_s29 = sadd.s32 4294967294, %s1240_s27   ;;  %s1240_s27 = sphi %s1298_s27, %s1589_s27   ;;  %s1236_s26 = sphi %s1296_s26, %s1588_s26   ;;  %s1232_s25 = sphi %s1294_s25, %s1587_s25   ;;  %s1228_s24 = sphi %s1292_s24, %s1586_s24  }
   0x8   : > { %p66_p0 = scmp.ne.s32.totalorder %s1232_s25, %s1228_s24  ;;  %p1567_p1 = scmp.eq.s32.totalorder %s1313_s28, 0 }
   0x9   : > { %p206_p3 = scmp.eq.s32.totalorder %s863_s29, 1  ;;  %p864_p5 = scmp.ge.s32.totalorder %s1240_s27, 1 }
   0xa   : > { %p1322_p4 = por %p1567_p1, %p66_p0  ;;  %p213_p7 = scmp.lt.s32.totalorder %s1240_s27, 3 }
   0xb   : > { %p1327_p6 = por %p206_p3, %p66_p0  ;;  %s1242_s10 = smov [#allocation7]  }
   0xc   : > { %s1570_s30 = scalar_select %p1322_p4, 1, 0 }
   0xd   : > { %s1571_s8 = scalar_select %p1327_p6, 1, 0 }
   0xe   : > { %p1332_p8 = pnand %p864_p5, %p213_p7  ;;  %s236_s11 = sshll.u32 %s1242_s10, 4  ;;  %s1336_s11 = int_to_ptr.vmem [resolvable:$true] %s236_s11 }
   0xf   : > { %s226_s14 = sshll.u32 %s1559_s0, 4  ;;  %s1243_s16 = smov [#allocation9]   ;;  %s1350_s14 = int_to_ptr.vmem [resolvable:$true] %s226_s14 }
  0x10   : > { %s1572_s9 = scalar_select %p1332_p8, 1, 0 }
  0x11   : > { %p953_p9 = pneg %p1332_p8  ;;  %s1352_s17 = sshll.u32 %s1243_s16, 4  ;;  %s253_s17 = int_to_ptr.vmem [resolvable:$true] %s1352_s17 }
  0x12   : > { %s1065_s20 = scalar_lea.hbm %s1562_s3, 2048 }
  0x13   : > { %p1346_p11 = pnand %p953_p9, %p1567_p1  ;;  %p1066_p12 = scmp.ne.s32.totalorder %s1562_s3, %s1065_s20 }
  0x14   : > { %p1072_p5 = scmp.lt.u32.totalorder %s1065_s20, %s1562_s3 }
  0x15   : > { %p1362_p13 = pneg %p1346_p11 }
  0x17   : > { %p1068_p0 = pnand %p1362_p13, %p1066_p12 }
  0x19   : > { %p1069_p3 = pneg %p1068_p0 }
  0x1b   : > { %p1074_p7 = pnand %p1072_p5, %p1069_p3 }
  0x1d   : > { %1077 = shalt.err (!%p1074_p7)
}
  0x1e   : > { %s1078_s12 = scalar_lea.vmem %s1336_s11, 2048  ;;  %p1086_p2 = scmp.lt.s32.totalorder %s1336_s11, %s1336_s11 }
  0x1f   : > { %p1079_p9 = scmp.ne.s32.totalorder %s1336_s11, %s1078_s12  ;;  %p1087_p6 = scmp.lt.s32.totalorder %s1078_s12, %s1078_s12 }
  0x21   : > { %p1081_p10 = pnand %p1079_p9, %p1362_p13  ;;  %p1088_p12 = por %p1087_p6, %p1086_p2 }
  0x23   : > { %p1082_p1 = pneg %p1081_p10 }
  0x25   : > { %p1089_p0 = pnand %p1088_p12, %p1082_p1 }
  0x27   : > { %1092 = shalt.err (!%p1089_p0)
}
  0x28   : > { %s1244_s13 = smov 128   ;;  %s1245_s16 = smov 8  }
  0x29   : > { %959 = dma.hbm_to_vmem [thread:$0]  (!%p1346_p11), %s1562_s3, 2048, %s1336_s11, [#allocation8], %s1244_s13, %s1244_s13, %s1245_s16  }
  0x2a   : > { %s1093_s20 = scalar_lea.vmem %s1350_s14, 16  ;;  %p1101_p1 = scmp.lt.s32.totalorder %s1350_s14, %s1350_s14 }
  0x2b   : > { %p1094_p10 = scmp.ne.s32.totalorder %s1350_s14, %s1093_s20  ;;  %p1102_p6 = scmp.lt.s32.totalorder %s1093_s20, %s1093_s20 }
  0x2d   : > { %p1096_p3 = pnand %p1094_p10, %p1362_p13  ;;  %p1103_p5 = por %p1102_p6, %p1101_p1 }
  0x2f   : > { %p1097_p2 = pneg %p1096_p3 }
  0x31   : > { %p1104_p7 = pnand %p1103_p5, %p1097_p2 }
  0x33   : > { %1107 = shalt.err (!%p1104_p7)
}
  0x34   : > { %s1246_s21 = smov [#allocation2]   ;;  %s1108_s29 = scalar_lea.hbm %s1564_s5, 2048 }
  0x35   : > { %956 = dma.vmem_to_smem (!%p1346_p11), %s1350_s14, 16, %s1246_s21, [#allocation5]  }
  0x36   : > { %p1109_p9 = scmp.ne.s32.totalorder %s1564_s5, %s1108_s29  ;;  %p1115_p10 = scmp.lt.u32.totalorder %s1108_s29, %s1564_s5 }
  0x38   : > { %p1111_p12 = pnand %p1109_p9, %p1362_p13 }
  0x3a   : > { %p1112_p0 = pneg %p1111_p12 }
  0x3c   : > { %p1117_p3 = pnand %p1115_p10, %p1112_p0 }
  0x3e   : > { %1120 = shalt.err (!%p1117_p3)
}
  0x3f   : > { %s1121_s18 = scalar_lea.vmem %s253_s17, 2048  ;;  %p1129_p5 = scmp.lt.s32.totalorder %s253_s17, %s253_s17 }
  0x40   : > { %p1122_p2 = scmp.ne.s32.totalorder %s253_s17, %s1121_s18  ;;  %p1130_p7 = scmp.lt.s32.totalorder %s1121_s18, %s1121_s18 }
  0x42   : > { %p1124_p1 = pnand %p1122_p2, %p1362_p13  ;;  %p1131_p4 = por %p1130_p7, %p1129_p5 }
  0x44   : > { %p1125_p6 = pneg %p1124_p1 }
  0x46   : > { %p1132_p8 = pnand %p1131_p4, %p1125_p6 }
  0x48   : > { %1135 = shalt.err (!%p1132_p8)
}
  0x49   : > { %s1247_s14 = smov 64   ;;  %s1248_s23 = smov 4  }
  0x4a   : > { %962 = dma.hbm_to_vmem [thread:$0]  (!%p1346_p11), %s1564_s5, 2048, %s253_s17, [#allocation8], %s1247_s14, %s1247_s14, %s1248_s23  }
  0x4b   : > { %s1412_s21 = sadd.s32 1, %s1240_s27   ;;  %s53_s22 = sadd.s32 1, %s1236_s26 }
  0x4c   : > { %s50_s11 = ssub.s32 %s1240_s27, %s1412_s21  ;;  %p60_p8 = scmp.ne.s32.totalorder %s1236_s26, %s1232_s25 }
  0x4d   : > { %p51_p4 = scmp.eq.s32.totalorder %s50_s11, 0  ;;  %p61_p13 = scmp.eq.s32.totalorder %s1240_s27, 0 }
  0x4e   : > { %p974_p9 = scmp.lt.s32.totalorder %s1240_s27, 2  ;;  %p1575_p0 = scmp.eq.s32.totalorder %s1313_s28, 1 }
  0x4f   : > { %s1422_s29 = scalar_select %p51_p4, %s1236_s26, %s53_s22  }
  0x50   : > { %p62_p12 = por %p61_p13, %p60_p8  ;;  %p1426_p10 = por %p1575_p0, %p60_p8 }
  0x51   : > { %s269_s15 = sand.u32 1, %s1236_s26   ;;  %s870_s12 = sshll.u32 %s1240_s27, 7 }
  0x52   : > { %s869_s17 = sshll.u32 %s269_s15, 3  ;;  %s1435_s18 = scalar_lea.hbm %s1560_s1, %s870_s12 }
  0x53   : > { %s273_s14 = scalar_lea.vmem [#allocation6], %s869_s17  ;;  %p1437_p11 = pnand %p974_p9, %p62_p12 }
  0x54   : > { %s280_s23 = sshll.u32 %s273_s14, 4  ;;  %s270_s20 = scalar_lea.sflag [#allocation3], %s269_s15  ;;  %s1441_s23 = int_to_ptr.vmem [resolvable:$true] %s280_s23 }
  0x55   : > { %s1136_s11 = scalar_lea.hbm %s1435_s18, 128  ;;  %p1138_p2 = pneg %p1437_p11 }
  0x56   : > { %p1137_p3 = scmp.ne.s32.totalorder %s1435_s18, %s1136_s11  ;;  %s1141_s17 = scalar_lea.hbm %s1560_s1, 256 }
  0x57   : > { %p1142_p5 = scmp.lt.u32.totalorder %s1435_s18, %s1560_s1  ;;  %p1143_p7 = scmp.lt.u32.totalorder %s1141_s17, %s1136_s11 }
  0x58   : > { %p1139_p1 = pnand %p1138_p2, %p1137_p3  ;;  %p1145_p8 = scmp.lt.u32.totalorder %s1136_s11, %s1435_s18 }
  0x59   : > { %p1144_p4 = por %p1143_p7, %p1142_p5 }
  0x5a   : > { %p1140_p6 = pneg %p1139_p1 }
  0x5b   : > { %p1146_p13 = por %p1145_p8, %p1144_p4 }
  0x5d   : > { %p1147_p9 = pnand %p1146_p13, %p1140_p6 }
  0x5f   : > { %1150 = shalt.err (!%p1147_p9)
}
  0x60   : > { %s1151_s15 = scalar_lea.vmem %s1441_s23, 128  ;;  %s1249_s14 = smov [#allocation6]  }
  0x61   : > { %p1152_p12 = scmp.ne.s32.totalorder %s1441_s23, %s1151_s15  ;;  %s1156_s22 = sshll.u32 %s1249_s14, 4  ;;  %s1157_s22 = int_to_ptr.vmem [resolvable:$false] %s1156_s22 }
  0x62   : > { %s1158_s12 = scalar_lea.vmem %s1157_s22, 256  ;;  %p1159_p1 = scmp.lt.s32.totalorder %s1441_s23, %s1157_s22 }
  0x63   : > { %p1154_p0 = pnand %p1152_p12, %p1138_p2  ;;  %p1160_p5 = scmp.lt.s32.totalorder %s1158_s12, %s1151_s15 }
  0x65   : > { %p1155_p3 = pneg %p1154_p0  ;;  %p1161_p7 = por %p1160_p5, %p1159_p1 }
  0x67   : > { %p1162_p4 = pnand %p1161_p7, %p1155_p3 }
  0x69   : > { %1165 = shalt.err (!%p1162_p4)
}
  0x6a   : > { %966 = dma.hbm_to_vmem [thread:$0]  (!%p1437_p11), %s1435_s18, 128, %s1441_s23, %s270_s20  }
  0x6b   : > { %p1578_p6 = scmp.ne.s32.totalorder %s1572_s9, 0 }
  0x6c   : > { %p1579_p2 = scmp.eq.s32.totalorder (!%p1578_p6), %s1313_s28, 0 }
  0x6d   : > { %296 = sbr.rel (%p1578_p6) target bundleno = 789 (0x315), region = 48 }
  0x74   : > { %1211 = dma.done.wait (%p1579_p2), [#allocation5], 16   ;;  %p1580_p8 = pmov %p1579_p2 }
  0x75   : > { %s1475_s11 = sand.u32 1, %s1232_s25   ;;  %p1581_p11 = scmp.ne.s32.totalorder %s1570_s30, 0 }
  0x76   : > { %1213 = vsyncadd (%p1580_p8), [#allocation5], 4294967280  ;;  %s873_s19 = sshll.u32 %s1475_s11, 3  ;;  %s303_s17 = scalar_lea.sflag [#allocation3], %s1475_s11 }
  0x77   : > { %s1481_s18 = scalar_lea.vmem [#allocation6], %s873_s19 }
  0x78   : > { %1215 = dma.done.wait (%p1581_p11), %s303_s17, 128  }
  0x79   : > { %1217 = vsyncadd (%p1581_p11), %s303_s17, 4294967168  ;;  %p1582_p13 = pmov %p1579_p2 }
  0x7a   : > { %p1583_p9 = pmov %p1579_p2 }
  0x7b   : > { %1219 = dma.done.wait (%p1582_p13), [#allocation8], 4096  }
  0x7c   : > { %1221 = vsyncadd (%p1583_p9), [#allocation8], 4294963200 }
  0x7d   : > { %319 = sfence }
  0x7e   : > { %v1019_v0 = vld [vmem:[#allocation7 + $0x4] ss:$8 sps:$4 sm:$0xff]   ;;  %v1021_v1 = vld [vmem:[#allocation7] ss:$8 sps:$4 sm:$0xff]   ;;  %v1250_v2 = vmov 0   ;;  %p350_p12 = scmp.lt.s32.totalorder %s1313_s28, 1  ;;  %v375_v35 = vlaneseq }
  0x7f   : > { %497 = vmatprep.mubr.bf16.mxu0 %v1250_v2  ;;  %465 = vmatprep.subr.bf16.mxu0 %v1019_v0  ;;  %v1022_v3 = vld [vmem:[#allocation7 + $0x14] ss:$8 sps:$4 sm:$0xff]   ;;  %v1024_v4 = vld [vmem:[#allocation7 + $0x10] ss:$8 sps:$4 sm:$0xff]   ;;  %v1025_v5 = vld [vmem:[#allocation7 + $0x24] ss:$8 sps:$4 sm:$0xff]  }
  0x80   : > { %466 = vmatpush1.bf16.msra.mxu0 %v1021_v1  ;;  %v1027_v6 = vld [vmem:[#allocation7 + $0x20] ss:$8 sps:$4 sm:$0xff]   ;;  %v1028_v7 = vld [vmem:[#allocation7 + $0x34] ss:$8 sps:$4 sm:$0xff]   ;;  %v1030_v8 = vld [vmem:[#allocation7 + $0x30] ss:$8 sps:$4 sm:$0xff]  }
  0x81   : > { %467 = vmatprep.subr.bf16.mxu0 %v1022_v3  ;;  %v1031_v9 = vld [vmem:[#allocation7 + $0x44] ss:$8 sps:$4 sm:$0xff]   ;;  %s351_s30 = scalar_select %p350_p12, %s1313_s28, 1  ;;  %v1033_v12 = vld [vmem:[#allocation7 + $0x40] ss:$8 sps:$4 sm:$0xff]   ;;  %v1047_v23 = vld [vmem:[#allocation9 + $0x50] sm:$0xff]  }
  0x82   : > { %v1043_v10 = vld [vmem:[#allocation9 + $0x40] sm:$0xff]   ;;  %v1045_v13 = vld [vmem:[#allocation9 + $0x48] sm:$0xff]   ;;  %v1034_v15 = vld [vmem:[#allocation7 + $0x54] ss:$8 sps:$4 sm:$0xff]   ;;  %v376_v36 = vshrl.u32 %v375_v35, 7  ;;  %s697_s14 = smul.u32 3, %s1313_s28 }
  0x83   : > { %v1044_v11 = vld [vmem:[#allocation9] sm:$0xff]   ;;  %915 = vmatprep.subr.bf16.mxu1 %v1043_v10  ;;  %s877_s9 = sshll.u32 %s351_s30, 3  ;;  %v1046_v14 = vld [vmem:[#allocation9 + $0x8] sm:$0xff]   ;;  %v1036_v16 = vld [vmem:[#allocation7 + $0x50] ss:$8 sps:$4 sm:$0xff]   ;;  %s349_s16 = scalar_lea.vmem [#allocation10], %s873_s19 }
  0x84   : > { %468 = vmatpush1.bf16.msra.mxu0 %v1024_v4  ;;  %916 = vmatpush3.bf16.msra.mxu1 %v1044_v11  ;;  %v1037_v17 = vld [vmem:[#allocation7 + $0x64] ss:$8 sps:$4 sm:$0xff]   ;;  %v1039_v18 = vld [vmem:[#allocation7 + $0x60] ss:$8 sps:$4 sm:$0xff]   ;;  %v1040_v19 = vld [vmem:[#allocation7 + $0x74] ss:$8 sps:$4 sm:$0xff]   ;;  %s353_s13 = scalar_lea.vmem %s1561_s2, %s877_s9 }
  0x85   : > { %469 = vmatprep.subr.bf16.mxu0 %v1025_v5  ;;  %917 = vmatprep.subr.bf16.mxu1 %v1045_v13  ;;  %v1042_v20 = vld [vmem:[#allocation7 + $0x70] ss:$8 sps:$4 sm:$0xff]   ;;  %v1051_v27 = vld [vmem:[#allocation9 + $0x60] sm:$0xff]   ;;  %v1053_v29 = vld [vmem:[#allocation9 + $0x68] sm:$0xff]   ;;  %v377_v37 = vsub.s32 0, %v376_v36  ;;  %v381_v39 = vsub.s32 1, %v376_v36 }
  0x86   : > { %v1496_v21 = vld [vmem:[%s353_s13] sm:$0xff]  ;;  %v1049_v25 = vld [vmem:[#allocation9 + $0x58] sm:$0xff]   ;;  %v1052_v28 = vld [vmem:[#allocation9 + $0x20] sm:$0xff]   ;;  %s708_s22 = sadd.s32 1, %s697_s14  ;;  %s719_s12 = sadd.s32 2, %s697_s14 }
  0x87   : > { %v356_v22 = vpack.c.bf16 %v1496_v21, %v1496_v21  ;;  %v1048_v24 = vld [vmem:[#allocation9 + $0x10] sm:$0xff]   ;;  %v1050_v26 = vld [vmem:[#allocation9 + $0x18] sm:$0xff]   ;;  %v1054_v30 = vld [vmem:[#allocation9 + $0x28] sm:$0xff]   ;;  %s698_s17 = sld [smem:[#allocation2 + %s697_s14]]  ;;  %s912_s13 = sshll.u32 %s1313_s28, 7 }
  0x88   : > { %470 = vmatpush1.bf16.msra.mxu0 %v1027_v6  ;;  %918 = vmatpush3.bf16.msra.mxu1 %v1046_v14  ;;  %v1055_v31 = vld [vmem:[#allocation9 + $0x70] sm:$0xff]   ;;  %v1057_v33 = vld [vmem:[#allocation9 + $0x78] sm:$0xff]   ;;  %s709_s30 = sld [smem:[#allocation2 + %s708_s22]]  ;;  %s750_s15 = sshll.u32 %s349_s16, 4  ;;  %s1517_s15 = int_to_ptr.vmem [resolvable:$true] %s750_s15 }
  0x89   : > { %471 = vmatprep.subr.bf16.mxu0 %v1028_v7  ;;  %919 = vmatprep.subr.bf16.mxu1 %v1047_v23  ;;  %v1056_v32 = vld [vmem:[#allocation9 + $0x30] sm:$0xff]   ;;  %v1058_v34 = vld [vmem:[#allocation9 + $0x38] sm:$0xff]   ;;  %s720_s9 = sld [smem:[#allocation2 + %s719_s12]]  ;;  %v727_v7 = vsub.s32 2, %v376_v36  ;;  %s1515_s22 = scalar_lea.hbm %s1566_s7, %s912_s13 }
  0x8a   : > { %v373_v38 = vld [vmem:[%s1563_s4] sm:$0x3]  ;;  %s737_s12 = scalar_lea.sflag [#allocation4], %s1475_s11  ;;  %s1251_s28 = smov [#allocation10]  }
  0x8b   : > { %v378_v40 = vrot.slane %v373_v38, %v377_v37  ;;  %v382_v41 = vrot.slane %v373_v38, %v381_v39  ;;  %v894_v61 = vld [vmem:[%s1565_s6] ss:$0 sm:$0xff]  ;;  %s1170_s19 = sshll.u32 %s1251_s28, 4  ;;  %s1171_s19 = int_to_ptr.vmem [resolvable:$false] %s1170_s19 }
  0x8c   : > { %472 = vmatpush1.bf16.msra.mxu0 %v1030_v8  ;;  %920 = vmatpush3.bf16.msra.mxu1 %v1048_v24  ;;  %v696_v8 = vld [vmem:[%s1481_s18] sm:$0xff]  ;;  %p1173_p5 = scmp.lt.s32.totalorder %s1517_s15, %s1171_s19 }
  0x8d   : > { %473 = vmatprep.subr.bf16.mxu0 %v1031_v9  ;;  %921 = vmatprep.subr.bf16.mxu1 %v1049_v25  ;;  %v699_v3 = vstv %s698_s17  ;;  %s1166_s17 = scalar_lea.vmem %s1517_s15, 128 }
  0x8e   : > { %v710_v4 = vstv %s709_s30  ;;  %vm700_vm0 = vcmp.eq.s32.totalorder %v376_v36, %v699_v3  ;;  %p1167_p0 = scmp.ne.s32.totalorder %s1517_s15, %s1166_s17  ;;  %s1172_s30 = scalar_lea.vmem %s1171_s19, 256 }
  0x8f   : > { %v721_v6 = vstv %s720_s9  ;;  %vm711_vm1 = vcmp.eq.s32.totalorder %v376_v36, %v710_v4  ;;  %p1174_p7 = scmp.lt.s32.totalorder %s1172_s30, %s1166_s17 }
  0x90   : > { %474 = vmatpush1.bf16.msra.mxu0 %v1033_v12  ;;  %922 = vmatpush3.bf16.msra.mxu1 %v1050_v26  ;;  %vm722_vm2 = vcmp.eq.s32.totalorder %v376_v36, %v721_v6  ;;  %p1168_p3 = pnand %p1167_p0, %p1426_p10 }
  0x91   : > { %475 = vmatprep.subr.bf16.mxu0 %v1034_v15  ;;  %923 = vmatprep.subr.bf16.mxu1 %v1051_v27  ;;  %p1175_p4 = por %p1174_p7, %p1173_p5 }
  0x92   : > { %p1169_p1 = pneg %p1168_p3 }
  0x94   : > { %476 = vmatpush1.bf16.msra.mxu0 %v1036_v16  ;;  %924 = vmatpush3.bf16.msra.mxu1 %v1052_v28  ;;  %p1176_p6 = pnand %p1175_p4, %p1169_p1 }
  0x95   : > { %477 = vmatprep.subr.bf16.mxu0 %v1037_v17  ;;  %925 = vmatprep.subr.bf16.mxu1 %v1053_v29 }
  0x98   : > { %478 = vmatpush1.bf16.msra.mxu0 %v1039_v18  ;;  %926 = vmatpush3.bf16.msra.mxu1 %v1054_v30 }
  0x99   : > { %479 = vmatprep.subr.bf16.mxu0 %v1040_v19  ;;  %927 = vmatprep.subr.bf16.mxu1 %v1055_v31 }
  0x9c   : > { %480 = vmatpush1.bf16.msra.mxu0 %v1042_v20  ;;  %928 = vmatpush3.bf16.msra.mxu1 %v1056_v32 }
  0x9d   : > { %929 = vmatprep.subr.bf16.mxu1 %v1057_v33 }
  0x9f   : > { %498 = vmatmul.mubr.bf16.vlgmr.msra.gmra.mrb[0].mxu0 %v356_v22 }
  0xa0   : > { %930 = vmatpush3.bf16.msra.mxu1 %v1058_v34 }
 0x172   : > { %v499_v42 = vpop.f32.mrb[0].mxu0 }
 0x173   : > { %v500_v43 = vadd.f32 %v499_v42, %v378_v40  ;;  %v501_v44 = vpop.f32.mrb[1].mxu0 }
 0x174   : > { %v502_v45 = vadd.f32 %v501_v44, %v382_v41  ;;  %v503_v46 = vpop.f32.mrb[2].mxu0 }
 0x175   : > { %v508_v47 = vmul.f32 0.70710677, %v500_v43  ;;  %v504_v48 = vpop.f32.mrb[3].mxu0  ;;  %v506_v52 = vmul.f32 0.5, %v500_v43 }
 0x176   : > { %v509_v49 = vmul.f32 0.70710677, %v502_v45  ;;  %v507_v54 = vmul.f32 0.5, %v502_v45 }
 0x177   : > { %1059 = verf.f32 %v508_v47 }
 0x178   : > { %1061 = verf.f32 %v509_v49 }
 0x181   : > { %v1060_v50 = vpop.eup %1059 }
 0x182   : > { %v1062_v51 = vpop.eup %1061  ;;  %v512_v53 = vadd.f32 1.0, %v1060_v50 }
 0x183   : > { %v513_v55 = vadd.f32 1.0, %v1062_v51 }
 0x184   : > { %v514_v56 = vmul.f32 %v512_v53, %v506_v52 }
 0x185   : > { %v515_v57 = vmul.f32 %v513_v55, %v507_v54 }
 0x186   : > { %v516_v59 = vpack.c.bf16 %v514_v56, %v514_v56 }
 0x187   : > { %v517_v58 = vpack.c.bf16 %v515_v57, %v515_v57 }
 0x189   : > { %685 = vmatprep.mubr.bf16.mxu1 %v517_v58 }
 0x18a   : > { %686 = vmatmul.mubr.bf16.vlgmr.msra.gmra.mrb[0].mxu1 %v516_v59 }
 0x25d   : > { %v931_v60 = vpop.f32.mrb[0].mxu1 }
 0x25e   : > { %v932_v62 = vpop.f32.mrb[1].mxu1 }
 0x25f   : > { %v933_v63 = vadd.f32 %v932_v62, %v931_v60  ;;  %v934_v0 = vpop.f32.mrb[2].mxu1 }
 0x260   : > { %v935_v1 = vpop.f32.mrb[3].mxu1 }
 0x261   : > { %v688_v2 = vadd.f32 %v933_v63, %v894_v61 }
 0x263   : > { %v693_v5 = vadd.f32 %v688_v2, %v1496_v21 }
 0x265   : > { %v706_v9 = vrot.slane %v693_v5, %v377_v37  ;;  %v717_v10 = vrot.slane %v693_v5, %v381_v39  ;;  %v728_v12 = vrot.slane %v693_v5, %v727_v7 }
 0x267   : > { %v707_v11 = vsel %vm700_vm0, %v706_v9, %v696_v8 }
 0x268   : > { %v718_v13 = vsel %vm711_vm1, %v717_v10, %v707_v11 }
 0x269   : > { %v729_v14 = vsel %vm722_vm2, %v728_v12, %v718_v13 }
 0x26a   : > { %v730_v15 = vmul.f32 %v729_v14, %v729_v14 }
 0x26c   : > { %731 = vadd.xlane.f32.xlu0 %v730_v15 }
 0x2f9   : > { %v732_v16 = vpop.xlane.xlu0 %731 }
 0x2fa   : > { %1063 = vrsqrt.f32 %v732_v16 }
 0x304   : > { %v1064_v17 = vpop.eup %1063 }
 0x305   : > { %v734_v18 = vmul.f32 %v1064_v17, %v729_v14 }
 0x307   : > { %735 = vst [vmem:[%s349_s16] sm:$0xff] %v734_v18 }
 0x308   : > { %1179 = shalt.err (!%p1176_p6)
}
 0x309   : > { %s1180_s11 = scalar_lea.hbm %s1515_s22, 128  ;;  %s1184_s20 = scalar_lea.hbm %s1566_s7, 256 }
 0x30a   : > { %p1181_p2 = scmp.ne.s32.totalorder %s1515_s22, %s1180_s11  ;;  %p1185_p13 = scmp.lt.u32.totalorder %s1515_s22, %s1566_s7 }
 0x30b   : > { %p1186_p9 = scmp.lt.u32.totalorder %s1184_s20, %s1180_s11  ;;  %p1188_p0 = scmp.lt.u32.totalorder %s1180_s11, %s1515_s22 }
 0x30c   : > { %p1182_p8 = pnand %p1181_p2, %p1426_p10 }
 0x30d   : > { %p1187_p12 = por %p1186_p9, %p1185_p13 }
 0x30e   : > { %p1183_p11 = pneg %p1182_p8 }
 0x30f   : > { %p1189_p3 = por %p1188_p0, %p1187_p12 }
 0x311   : > { %p1190_p1 = pnand %p1189_p3, %p1183_p11 }
 0x313   : > { %1193 = shalt.err (!%p1190_p1)
}
 0x314   : > { %951 = dma.vmem_to_hbm [thread:$0]  (%p1426_p10), %s1517_s15, 128, %s1515_s22, %s737_s12  }
 0x315 PF: > { %s762_s18 = sand.u32 1, %s1228_s24   ;;  %p1584_p5 = scmp.ne.s32.totalorder %s1571_s8, 0 }
 0x316   : > { %p1585_p7 = scmp.ge.s32.totalorder %s1240_s27, 2  ;;  %s763_s14 = scalar_lea.sflag [#allocation4], %s762_s18 }
 0x318   : > { %p968_p4 = pnand %p1585_p7, %p1584_p5 }
 0x31a   : > { %1223 = dma.done.wait (!%p968_p4), %s763_s14, 128  }
 0x31b   : > { %1225 = vsyncadd (!%p968_p4), %s763_s14, 4294967168  ;;  %p22_p6 = scmp.ge.s32.totalorder %s1412_s21, 4   ;;  %s1586_s24 = smov %s1232_s25 }
 0x31c   : > { %s1587_s25 = smov %s1236_s26  ;;  %s1588_s26 = smov %s1422_s29 }
 0x31d   : > { %s1589_s27 = smov %s1412_s21  ;;  %24 = sbr.rel (!%p22_p6) target bundleno = 7 (0x7), region = 109 }
 0x324   :  { %768 = vsyncpa [#allocation3], 1 }
 0x325   :  { %770 = vsyncpa [#allocation3 + $0x1], 1 }
 0x326   :  { %771 = vsyncpa [#allocation8], 1 }
 0x327   :  { %772 = vsyncpa [#allocation4], 1 }
 0x328   :  { %774 = vsyncpa [#allocation4 + $0x1], 1 }
 0x329   :  { %775 = vsyncpa [#allocation5], 1 }
 0x32a   :  { %777 = vsyncpa [#allocation5 + $0x1], 1 }

</bundles_post_ra>
